<compile_context>
chip_gen: v5e
topology: v5e:2x2
jax: 0.10.0
libtpu: 0.0.40
codegen_flags: <defaults>
</compile_context>

<pallas_src>
import functools

import jax
import jax.numpy as jnp
from jax.experimental import pallas as pl
from jax.experimental.pallas import tpu as pltpu


def _round_up(x, m):
    return ((x + m - 1) // m) * m


def _vmem_budget():
    """Returns (vmem_capacity_bytes, max_bytes_we_should_request)."""
    try:
        cap = int(pltpu.get_tpu_info().vmem_capacity_bytes)
    except Exception:
        cap = 64 << 20  # conservative (v7x per-TC) fallback
    # Never request the whole VMEM: leave headroom for compiler scratch.
    limit_cap = min(cap - (16 << 20), int(cap * 0.75))
    return cap, max(limit_cap, 16 << 20)


def _choose_out_tiling(out_dim, max_n_tile, min_n_tile=512):
    """Lane-dense output tile (multiple of 128) + padded output width.

    Prefer wide tiles (>=512) and pad out_dim up to a multiple of the tile,
    picking the candidate that minimizes the padded width (ties -> wider tile).
    For small outputs split into >=2 tiles so both v7x TensorCores get work.
    """
    out128 = _round_up(out_dim, 128)
    if out128 <= 128:
        return 128, out128
    hi = min(max_n_tile, out128)
    lo = min(min_n_tile, hi)
    best_tile, best_pad = None, None
    for cand in range(lo, hi + 1, 128):
        pad = _round_up(out128, cand)
        if (best_pad is None or pad < best_pad
                or (pad == best_pad and cand > best_tile)):
            best_tile, best_pad = cand, pad
    if best_pad // best_tile < 2:  # give the 2nd TensorCore (v7x) some work
        half = max(128, _round_up((out128 + 1) // 2, 128))
        best_tile = min(best_tile, half)
        best_pad = _round_up(out128, best_tile)
    return best_tile, best_pad


def _fused_gan_generator_kernel(x_ref, w_ref, b_ref, o_ref):
    # One MXU matmul over the fused affine map; bias + tanh on the VPU/EUP.
    acc = jnp.dot(x_ref[...].astype(w_ref.dtype), w_ref[...],
                  preferred_element_type=jnp.float32)
    o_ref[...] = jnp.tanh(acc + b_ref[...]).astype(o_ref.dtype)


def prepare_params(params, image_size, *, max_n_tile=None,
                   weight_dtype=jnp.float32):
    """One-off: collapse the 4 affine layers and pad to the output tiling.

    GanGenerator has no inter-layer nonlinearity/normalization, so
      W_f = W1 @ W2 @ W3 @ W4 ;  b_f = ((b1 @ W2 + b2) @ W3 + b3) @ W4 + b4.
    Call this ONCE and reuse (w_p, b_p, cfg) for every forward call.
    """
    w, b = params[0]
    for wi, bi in params[1:]:
        w = jnp.dot(w, wi, precision=jax.lax.Precision.HIGHEST)
        b = jnp.dot(b, wi, precision=jax.lax.Precision.HIGHEST) + bi
    latent_dim, out_dim = w.shape
    assert out_dim == image_size * image_size

    vmem_cap, vmem_limit_cap = _vmem_budget()
    if max_n_tile is None:
        # Bigger tiles (fewer grid steps, wider DMAs) on 128 MiB v5e/v6e parts.
        max_n_tile = 8192 if vmem_cap >= (96 << 20) else 2048
    n_tile, out_pad = _choose_out_tiling(out_dim, max_n_tile)

    w_p = jnp.pad(w, ((0, 0), (0, out_pad - out_dim))).astype(weight_dtype)
    b_p = jnp.pad(b, ((0, 0), (0, out_pad - out_dim))).astype(jnp.float32)

    cfg = dict(image_size=image_size, out_dim=out_dim, out_pad=out_pad,
               n_tile=n_tile, vmem_limit_cap=vmem_limit_cap)
    return w_p, b_p, cfg


def gan_generator_forward(x, w_p, b_p, *, image_size, out_dim, out_pad,
                          n_tile, vmem_limit_cap):
    """x: (B, latent_dim) float32. Returns (B, 1, image_size, image_size)."""
    B, latent_dim = x.shape

    # Don't pad small batches to 128: the kernel is output-write bound.
    batch_tile = min(128, _round_up(max(B, 1), 8))
    b_pad = _round_up(max(B, 1), batch_tile)
    x_p = x if b_pad == B else jnp.pad(x, ((0, b_pad - B), (0, 0)))

    # Output-feature axis OUTER, batch INNER: the weight/bias block index is
    # constant across consecutive inner steps, so the (big) weight tile stays
    # resident in VMEM and only the small x tile is re-streamed.
    grid = (out_pad // n_tile, b_pad // batch_tile)

    w_bytes = jnp.dtype(w_p.dtype).itemsize
    vmem_bytes = (2 * batch_tile * latent_dim * 4
                  + 2 * latent_dim * n_tile * w_bytes
                  + 2 * n_tile * 4
                  + 2 * batch_tile * n_tile * 4) + (2 << 20)
    vmem_limit = int(min(max(vmem_bytes, 16 << 20), vmem_limit_cap))

    out_flat = pl.pallas_call(
        _fused_gan_generator_kernel,
        out_shape=jax.ShapeDtypeStruct((b_pad, out_pad), jnp.float32),
        grid_spec=pltpu.PrefetchScalarGridSpec(
            num_scalar_prefetch=0,
            grid=grid,
            in_specs=[
                pl.BlockSpec((batch_tile, latent_dim), lambda j, i: (i, 0)),
                pl.BlockSpec((latent_dim, n_tile), lambda j, i: (0, j)),
                pl.BlockSpec((1, n_tile), lambda j, i: (0, j)),
            ],
            out_specs=pl.BlockSpec((batch_tile, n_tile), lambda j, i: (i, j)),
        ),
        compiler_params=pltpu.CompilerParams(
            dimension_semantics=("parallel", "arbitrary"),
            vmem_limit_bytes=vmem_limit),
    )(x_p, w_p, b_p)

    if b_pad != B or out_pad != out_dim:
        out_flat = out_flat[:B, :out_dim]
    return out_flat.reshape(B, 1, image_size, image_size)


def init_params(key, latent_dim, image_size):
    """PyTorch nn.Linear-style init (U[-1/sqrt(in), 1/sqrt(in)]).

    Weights are stored transposed relative to PyTorch, i.e. (in, out)."""
    dims = [latent_dim, 256, 512, 1024, image_size * image_size]
    params = []
    for fan_in, fan_out in zip(dims[:-1], dims[1:]):
        key, kw, kb = jax.random.split(key, 3)
        bound = 1.0 / (fan_in ** 0.5)
        w = jax.random.uniform(kw, (fan_in, fan_out), jnp.float32, -bound, bound)
        b = jax.random.uniform(kb, (1, fan_out), jnp.float32, -bound, bound)
        params.append((w, b))
    return params


def reference_forward(x, params, image_size):
    h = x
    for w, b in params:
        h = jnp.dot(h, w, precision=jax.lax.Precision.HIGHEST) + b
    h = jnp.tanh(h)
    return h.reshape(-1, 1, image_size, image_size)


if __name__ == "__main__":
    latent_dim = 128
    image_size = 28   # module default; out_dim = 784 -> two 512-wide tiles
    batch = 8         # batch tile = 8 (no 128-row padding anymore)

    key = jax.random.PRNGKey(0)
    key, kx = jax.random.split(key)
    x = jax.random.normal(kx, (batch, latent_dim), jnp.float32)
    params = init_params(key, latent_dim, image_size)

    # One-off fusion + padding (cached); the jitted forward only does the
    # single Pallas matmul+bias+tanh.
    w_p, b_p, cfg = prepare_params(params, image_size)
    w_p, b_p = jax.block_until_ready((w_p, b_p))

    fwd = jax.jit(functools.partial(gan_generator_forward, **cfg))
    y = fwd(x, w_p, b_p)
    y = jax.block_until_ready(y)

    y_ref = reference_forward(x, params, image_size)
    assert y.shape == (batch, 1, image_size, image_size), y.shape
    # Fused-affine vs. sequential 4-matmul reference: identical math, slightly
    # different f32 rounding, hence the (still tight) tolerance.
    assert jnp.allclose(y, y_ref, atol=1e-3, rtol=1e-3), float(
        jnp.max(jnp.abs(y - y_ref)))

    print("KERNEL_OK")
</pallas_src>

<mosaic_0001>
module attributes {stable_mosaic.version = 11 : i64} {
  func.func @_fused_gan_generator_kernel(%arg0: i32, %arg1: i32, %arg2: memref<8x128xf32, #tpu.memory_space<vmem>>, %arg3: memref<128x512xf32, #tpu.memory_space<vmem>>, %arg4: memref<1x512xf32, #tpu.memory_space<vmem>>, %arg5: memref<8x512xf32, #tpu.memory_space<vmem>>) attributes {dimension_semantics = [#tpu.dimension_semantics<parallel>, #tpu.dimension_semantics<arbitrary>], iteration_bounds = array<i64: 2, 1>, scalar_prefetch = 0 : i64, scratch_operands = 0 : i64, tpu.core_type = #tpu.core_type<tc>, window_params = [{transform_indices = @transform_0, window_bounds = array<i64: 8, 128>}, {transform_indices = @transform_1, window_bounds = array<i64: 128, 512>}, {transform_indices = @transform_2, window_bounds = array<i64: 1, 512>}, {transform_indices = @transform_3, window_bounds = array<i64: 8, 512>}]} {
    %c0 = arith.constant 0 : index
    %c0_0 = arith.constant 0 : index
    %0 = vector.load %arg2[%c0, %c0_0] : memref<8x128xf32, #tpu.memory_space<vmem>>, vector<8x128xf32>
    %c0_1 = arith.constant 0 : index
    %c0_2 = arith.constant 0 : index
    %1 = vector.load %arg3[%c0_1, %c0_2] : memref<128x512xf32, #tpu.memory_space<vmem>>, vector<128x512xf32>
    %cst = arith.constant dense<0.000000e+00> : vector<8x512xf32>
    %2 = tpu.matmul %0, %1, %cst {dimension_numbers = #tpu.dot_dimension_numbers<[1], [0], [0], [1], [0, 0, 1, 1], [], []>} : vector<8x128xf32>, vector<128x512xf32>, vector<8x512xf32> -> vector<8x512xf32>
    %c0_3 = arith.constant 0 : index
    %c0_4 = arith.constant 0 : index
    %3 = vector.load %arg4[%c0_3, %c0_4] : memref<1x512xf32, #tpu.memory_space<vmem>>, vector<1x512xf32>
    %4 = vector.broadcast %3 : vector<1x512xf32> to vector<8x512xf32>
    %5 = arith.addf %2, %4 : vector<8x512xf32>
    %6 = math.tanh %5 : vector<8x512xf32>
    %c0_5 = arith.constant 0 : index
    %c0_6 = arith.constant 0 : index
    %7 = vector.load %arg5[%c0_5, %c0_6] : memref<8x512xf32, #tpu.memory_space<vmem>>, vector<8x512xf32>
    tpu.vector_store %arg5[%c0_5, %c0_6], %6 {strides = array<i32>} : memref<8x512xf32, #tpu.memory_space<vmem>>, vector<8x512xf32>,
    return
  }
  func.func @transform_0(%arg0: i32, %arg1: i32) -> (i32, i32) {
    %c0_i32 = arith.constant 0 : i32
    %c0_i32_0 = arith.constant 0 : i32
    return %arg1, %c0_i32 : i32, i32
  }
  func.func @transform_1(%arg0: i32, %arg1: i32) -> (i32, i32) {
    %c0_i32 = arith.constant 0 : i32
    %c0_i32_0 = arith.constant 0 : i32
    return %c0_i32, %arg0 : i32, i32
  }
  func.func @transform_2(%arg0: i32, %arg1: i32) -> (i32, i32) {
    %c0_i32 = arith.constant 0 : i32
    %c0_i32_0 = arith.constant 0 : i32
    return %c0_i32, %arg0 : i32, i32
  }
  func.func @transform_3(%arg0: i32, %arg1: i32) -> (i32, i32) {
    %c0_i32 = arith.constant 0 : i32
    return %arg1, %arg0 : i32, i32
  }
}

</mosaic_0001>

<bundles_post_ra>
// kernel: gan_generator_forward.1
= control target key start
LH: loop header
LB: loop body
LE: loop exit
PB: predicated region body
PF: predicated region fallthrough
CT: control target
= control target key end

     0   :  { %8 = vsyncpa [#allocation3], 0  ;;  %s1038_s0 = inlined_call_operand.hbm [shape: f32[8,128], index: 0, kind: input, shape index: {}]   ;;  %s1039_s1 = inlined_call_operand.hbm [shape: f32[128,1024], index: 1, kind: input, shape index: {}]   ;;  %s1040_s2 = inlined_call_operand.hbm [shape: f32[1,1024], index: 2, kind: input, shape index: {}]   ;;  %s1041_s3 = inlined_call_operand.vmem [shape: f32[8,1024], index: 3, kind: output, shape index: {}]  }
   0x1   :  { %9 = vsyncpa [#allocation5], 0 }
   0x2   :  { %11 = vsyncpa [#allocation5 + $0x1], 0  ;;  %s836_s12 = smov 0   ;;  %s838_s13 = smov 0  }
   0x3   :  { %s840_s14 = smov 0   ;;  %s842_s15 = smov 0  }
   0x4   :  { %s844_s16 = smov 0   ;;  %s846_s17 = smov 0  }
   0x5 LB: > { %s29_s18 = sadd.s32 1, %s806_s16  ;;  %s62_s19 = sadd.s32 1, %s798_s14  ;;  %s810_s17 = sphi %s846_s17, %s17_s17   ;;  %s806_s16 = sphi %s844_s16, %s1051_s16   ;;  %s802_s15 = sphi %s842_s15, %s1050_s15   ;;  %s798_s14 = sphi %s840_s14, %s1049_s14   ;;  %s794_s13 = sphi %s838_s13, %s1048_s13   ;;  %s790_s12 = sphi %s836_s12, %s1047_s12  }
   0x6   : > { %p31_p0 = scmp.ge.s32.totalorder %s29_s18, 2  ;;  %p69_p1 = scmp.ne.s32.totalorder %s798_s14, %s794_s13 }
   0x7   : > { %p70_p2 = scmp.eq.s32.totalorder %s810_s17, 0  ;;  %p604_p4 = scmp.lt.s32.totalorder %s810_s17, 2 }
   0x8   : > { %s1053_s18 = smov (%p31_p0, %s29_s18), 0  ;;  %s167_s22 = sand.u32 1, %s810_s17  }
   0x9   : > { %p873_p3 = por %p70_p2, %p69_p1  ;;  %s59_s21 = ssub.s32 %s806_s16, %s1053_s18 }
   0xa   : > { %p60_p5 = scmp.eq.s32.totalorder %s59_s21, 0  ;;  %s169_s23 = sand.u32 1, %s798_s14  }
   0xb   : > { %s583_s24 = sshll.u32 %s806_s16, 5  ;;  %s570_s26 = sshll.u32 %s169_s23, 9 }
   0xc   : > { %s884_s25 = scalar_select %p60_p5, %s798_s14, %s62_s19  }
   0xd   : > { %s176_s29 = scalar_lea.hbm %s1039_s1, %s583_s24  ;;  %s171_s4 = scalar_lea.vmem [#allocation4], %s570_s26 }
   0xe   : > { %s177_s30 = sshll.u32 %s176_s29, 4  ;;  %s179_s5 = sshll.u32 %s171_s4, 4  ;;  %s178_s30 = int_to_ptr.hbm [resolvable:$true] %s177_s30  ;;  %s180_s5 = int_to_ptr.vmem [resolvable:$true] %s179_s5 }
   0xf   : > { %p893_p6 = pnand %p604_p4, %p873_p3  ;;  %s897_s7 = scalar_lea.sflag [#allocation5], %s167_s22 }
  0x10   : > { %s812_s8 = smov 1024   ;;  %s813_s9 = smov 512  }
  0x11   : > { %s814_s10 = smov 32   ;;  %s565_s11 = sadd.s32 4294967295, %s810_s17  }
  0x12   : > { %599 = dma.hbm_to_vmem [thread:$0]  (!%p893_p6), %s178_s30, 8192, %s180_s5, %s897_s7, %s812_s8, %s813_s9, %s814_s10  }
  0x13   : > { %p75_p7 = scmp.ne.s32.totalorder %s794_s13, %s790_s12  ;;  %p905_p8 = scmp.eq.s32.totalorder %s565_s11, 0 }
  0x14   : > { %p567_p9 = scmp.ge.s32.totalorder %s810_s17, 1  ;;  %p140_p10 = scmp.lt.s32.totalorder %s810_s17, 3 }
  0x15   : > { %p913_p11 = por %p905_p8, %p75_p7  ;;  %s154_s24 = sshll.u32 %s1038_s0, 4  ;;  %s155_s24 = int_to_ptr.hbm [resolvable:$true] %s154_s24 }
  0x16   : > { %p920_p12 = pnand %p567_p9, %p140_p10  ;;  %s573_s12 = sshll.u32 %s169_s23, 2 }
  0x17   : > { %s815_s27 = smov [#allocation2]   ;;  %s574_s29 = sshll.u32 %s806_s16, 2 }
  0x18   : > { %p592_p13 = pneg %p920_p12  ;;  %s156_s28 = sshll.u32 %s815_s27, 4  ;;  %s157_s28 = int_to_ptr.vmem [resolvable:$true] %s156_s28 }
  0x19   : > { %s197_s5 = scalar_lea.hbm %s1040_s2, %s574_s29  ;;  %s193_s8 = scalar_lea.vmem [#allocation6], %s573_s12 }
  0x1a   : > { %p593_p0 = pnand %p592_p13, %p905_p8  ;;  %s201_s9 = sshll.u32 %s193_s8, 4  ;;  %s202_s9 = int_to_ptr.vmem [resolvable:$true] %s201_s9 }
  0x1b   : > { %s199_s10 = sshll.u32 %s197_s5, 4  ;;  %210 = sbr.rel (%p920_p12) target bundleno = 212 (0xd4), region = 32  ;;  %s200_s10 = int_to_ptr.hbm [resolvable:$true] %s199_s10 }
  0x1c   : > { %595 = dma.hbm_to_vmem [thread:$0]  (!%p593_p0), %s155_s24, 128, %s157_s28, [#allocation3]  }
  0x1d   : > { %602 = dma.hbm_to_vmem [thread:$0]  (!%p893_p6), %s200_s10, 64, %s202_s9, %s897_s7  }
  0x20   : > { %781 = dma.done.wait (%p905_p8), [#allocation3], 128  }
  0x21   : > { %783 = vsyncadd (%p905_p8), [#allocation3], 4294967168  ;;  %s217_s23 = sand.u32 1, %s565_s11   ;;  %s219_s21 = sand.u32 1, %s794_s13  }
  0x22   : > { %s577_s22 = sshll.u32 %s219_s21, 9  ;;  %s218_s24 = scalar_lea.sflag [#allocation5], %s217_s23 }
  0x23   : > { %s944_s12 = scalar_lea.vmem [#allocation4], %s577_s22 }
  0x24   : > { %785 = dma.done.wait (%p913_p11), %s218_s24, 8256  }
  0x25   : > { %787 = vsyncadd (%p913_p11), %s218_s24, 4294959040  ;;  %v339_v0 = vld [vmem:[%s944_s12 + $0x1f0] sm:$0xff]  ;;  %v340_v1 = vld [vmem:[%s944_s12 + $0x1f8] sm:$0xff]  ;;  %s578_s6 = sshll.u32 %s219_s21, 2  ;;  %s579_s7 = sshll.u32 %s802_s15, 2 }
  0x26   : > { %v335_v2 = vld [vmem:[%s944_s12 + $0x1d0] sm:$0xff]  ;;  %391 = vmatpush.msra.mxu2 %v339_v0  ;;  %411 = vmatpush.msra.mxu3 %v340_v1  ;;  %v336_v3 = vld [vmem:[%s944_s12 + $0x1d8] sm:$0xff]  ;;  %v337_v4 = vld [vmem:[%s944_s12 + $0x1e0] sm:$0xff]  ;;  %s231_s11 = scalar_lea.vmem [#allocation6], %s578_s6  ;;  %p269_p1 = scmp.lt.s32.totalorder %s579_s7, 7 }
  0x27   : > { %v331_v5 = vld [vmem:[%s944_s12 + $0x1b0] sm:$0xff]  ;;  %351 = vmatpush.msra.mxu0 %v337_v4  ;;  %v338_v6 = vld [vmem:[%s944_s12 + $0x1e8] sm:$0xff]  ;;  %v332_v7 = vld [vmem:[%s944_s12 + $0x1b8] sm:$0xff] }
  0x28   : > { %v333_v8 = vld [vmem:[%s944_s12 + $0x1c0] sm:$0xff]  ;;  %392 = vmatpush.msra.mxu2 %v335_v2  ;;  %412 = vmatpush.msra.mxu3 %v336_v3  ;;  %v334_v9 = vld [vmem:[%s944_s12 + $0x1c8] sm:$0xff]  ;;  %v327_v10 = vld [vmem:[%s944_s12 + $0x190] sm:$0xff]  ;;  %s1055_s7 = smov (!%p269_p1, %s579_s7), 7 }
  0x29   : > { %371 = vmatpush.msra.mxu1 %v338_v6  ;;  %352 = vmatpush.msra.mxu0 %v333_v8  ;;  %v328_v11 = vld [vmem:[%s944_s12 + $0x198] sm:$0xff]  ;;  %v329_v12 = vld [vmem:[%s944_s12 + $0x1a0] sm:$0xff]  ;;  %v330_v13 = vld [vmem:[%s944_s12 + $0x1a8] sm:$0xff]  ;;  %s580_s19 = sshll.u32 %s1055_s7, 3 }
  0x2a   : > { %393 = vmatpush.msra.mxu2 %v331_v5  ;;  %413 = vmatpush.msra.mxu3 %v332_v7  ;;  %v325_v14 = vld [vmem:[%s944_s12 + $0x180] sm:$0xff]  ;;  %v323_v15 = vld [vmem:[%s944_s12 + $0x170] sm:$0xff]  ;;  %v324_v16 = vld [vmem:[%s944_s12 + $0x178] sm:$0xff]  ;;  %s274_s26 = scalar_lea.vmem %s1041_s3, %s580_s19 }
  0x2b   : > { %372 = vmatpush.msra.mxu1 %v334_v9  ;;  %353 = vmatpush.msra.mxu0 %v329_v12  ;;  %v326_v17 = vld [vmem:[%s944_s12 + $0x188] sm:$0xff]  ;;  %v321_v18 = vld [vmem:[%s944_s12 + $0x160] sm:$0xff]  ;;  %v319_v19 = vld [vmem:[%s944_s12 + $0x150] sm:$0xff] }
  0x2c   : > { %394 = vmatpush.msra.mxu2 %v327_v10  ;;  %414 = vmatpush.msra.mxu3 %v328_v11  ;;  %v320_v20 = vld [vmem:[%s944_s12 + $0x158] sm:$0xff]  ;;  %v322_v21 = vld [vmem:[%s944_s12 + $0x168] sm:$0xff]  ;;  %v317_v22 = vld [vmem:[%s944_s12 + $0x140] sm:$0xff] }
  0x2d   : > { %373 = vmatpush.msra.mxu1 %v330_v13  ;;  %354 = vmatpush.msra.mxu0 %v325_v14  ;;  %v315_v23 = vld [vmem:[%s944_s12 + $0x130] sm:$0xff]  ;;  %v316_v24 = vld [vmem:[%s944_s12 + $0x138] sm:$0xff]  ;;  %v318_v25 = vld [vmem:[%s944_s12 + $0x148] sm:$0xff] }
  0x2e   : > { %395 = vmatpush.msra.mxu2 %v323_v15  ;;  %415 = vmatpush.msra.mxu3 %v324_v16  ;;  %v313_v26 = vld [vmem:[%s944_s12 + $0x120] sm:$0xff]  ;;  %v311_v27 = vld [vmem:[%s944_s12 + $0x110] sm:$0xff]  ;;  %v312_v28 = vld [vmem:[%s944_s12 + $0x118] sm:$0xff] }
  0x2f   : > { %374 = vmatpush.msra.mxu1 %v326_v17  ;;  %355 = vmatpush.msra.mxu0 %v321_v18  ;;  %v314_v29 = vld [vmem:[%s944_s12 + $0x128] sm:$0xff]  ;;  %v309_v30 = vld [vmem:[%s944_s12 + $0x100] sm:$0xff]  ;;  %v307_v31 = vld [vmem:[%s944_s12 + $0xf0] sm:$0xff] }
  0x30   : > { %396 = vmatpush.msra.mxu2 %v319_v19  ;;  %416 = vmatpush.msra.mxu3 %v320_v20  ;;  %v308_v32 = vld [vmem:[%s944_s12 + $0xf8] sm:$0xff]  ;;  %v310_v33 = vld [vmem:[%s944_s12 + $0x108] sm:$0xff]  ;;  %v305_v34 = vld [vmem:[%s944_s12 + $0xe0] sm:$0xff] }
  0x31   : > { %375 = vmatpush.msra.mxu1 %v322_v21  ;;  %356 = vmatpush.msra.mxu0 %v317_v22  ;;  %v303_v35 = vld [vmem:[%s944_s12 + $0xd0] sm:$0xff]  ;;  %v304_v36 = vld [vmem:[%s944_s12 + $0xd8] sm:$0xff]  ;;  %v306_v37 = vld [vmem:[%s944_s12 + $0xe8] sm:$0xff] }
  0x32   : > { %397 = vmatpush.msra.mxu2 %v315_v23  ;;  %417 = vmatpush.msra.mxu3 %v316_v24  ;;  %v301_v38 = vld [vmem:[%s944_s12 + $0xc0] sm:$0xff]  ;;  %v299_v39 = vld [vmem:[%s944_s12 + $0xb0] sm:$0xff]  ;;  %v300_v40 = vld [vmem:[%s944_s12 + $0xb8] sm:$0xff] }
  0x33   : > { %376 = vmatpush.msra.mxu1 %v318_v25  ;;  %357 = vmatpush.msra.mxu0 %v313_v26  ;;  %v302_v41 = vld [vmem:[%s944_s12 + $0xc8] sm:$0xff]  ;;  %v297_v42 = vld [vmem:[%s944_s12 + $0xa0] sm:$0xff]  ;;  %v295_v43 = vld [vmem:[%s944_s12 + $0x90] sm:$0xff] }
  0x34   : > { %398 = vmatpush.msra.mxu2 %v311_v27  ;;  %418 = vmatpush.msra.mxu3 %v312_v28  ;;  %v296_v44 = vld [vmem:[%s944_s12 + $0x98] sm:$0xff]  ;;  %v298_v45 = vld [vmem:[%s944_s12 + $0xa8] sm:$0xff]  ;;  %v293_v46 = vld [vmem:[%s944_s12 + $0x80] sm:$0xff] }
  0x35   : > { %377 = vmatpush.msra.mxu1 %v314_v29  ;;  %358 = vmatpush.msra.mxu0 %v309_v30  ;;  %v291_v47 = vld [vmem:[%s944_s12 + $0x70] sm:$0xff]  ;;  %v292_v48 = vld [vmem:[%s944_s12 + $0x78] sm:$0xff]  ;;  %v294_v49 = vld [vmem:[%s944_s12 + $0x88] sm:$0xff] }
  0x36   : > { %399 = vmatpush.msra.mxu2 %v307_v31  ;;  %419 = vmatpush.msra.mxu3 %v308_v32  ;;  %v289_v50 = vld [vmem:[%s944_s12 + $0x60] sm:$0xff]  ;;  %v287_v51 = vld [vmem:[%s944_s12 + $0x50] sm:$0xff]  ;;  %v288_v52 = vld [vmem:[%s944_s12 + $0x58] sm:$0xff] }
  0x37   : > { %378 = vmatpush.msra.mxu1 %v310_v33  ;;  %359 = vmatpush.msra.mxu0 %v305_v34  ;;  %v290_v53 = vld [vmem:[%s944_s12 + $0x68] sm:$0xff]  ;;  %v285_v54 = vld [vmem:[%s944_s12 + $0x40] sm:$0xff]  ;;  %v283_v55 = vld [vmem:[%s944_s12 + $0x30] sm:$0xff] }
  0x38   : > { %400 = vmatpush.msra.mxu2 %v303_v35  ;;  %420 = vmatpush.msra.mxu3 %v304_v36  ;;  %v284_v56 = vld [vmem:[%s944_s12 + $0x38] sm:$0xff]  ;;  %v286_v57 = vld [vmem:[%s944_s12 + $0x48] sm:$0xff]  ;;  %v281_v58 = vld [vmem:[%s944_s12 + $0x20] sm:$0xff] }
  0x39   : > { %379 = vmatpush.msra.mxu1 %v306_v37  ;;  %360 = vmatpush.msra.mxu0 %v301_v38  ;;  %v279_v59 = vld [vmem:[%s944_s12 + $0x10] sm:$0xff]  ;;  %v280_v60 = vld [vmem:[%s944_s12 + $0x18] sm:$0xff]  ;;  %v282_v62 = vld [vmem:[%s944_s12 + $0x28] sm:$0xff] }
  0x3a   : > { %401 = vmatpush.msra.mxu2 %v299_v39  ;;  %421 = vmatpush.msra.mxu3 %v300_v40  ;;  %v276_v61 = vld [vmem:[#allocation2] sm:$0xff]  ;;  %v277_v63 = vld [vmem:[%s944_s12] sm:$0xff]  ;;  %v278_v0 = vld [vmem:[%s944_s12 + $0x8] sm:$0xff] }
  0x3b   : > { %380 = vmatpush.msra.mxu1 %v302_v41  ;;  %361 = vmatpush.msra.mxu0 %v297_v42  ;;  %v341_v1 = vld [vmem:[%s231_s11] sm:$0xf] }
  0x3c   : > { %402 = vmatpush.msra.mxu2 %v295_v43  ;;  %422 = vmatpush.msra.mxu3 %v296_v44  ;;  %v343_v2 = vperm.slane %v341_v1, 0  ;;  %v344_v3 = vperm.slane %v341_v1, 1  ;;  %v345_v6 = vperm.slane %v341_v1, 2  ;;  %v346_v7 = vperm.slane %v341_v1, 3 }
  0x3d   : > { %381 = vmatpush.msra.mxu1 %v298_v45  ;;  %362 = vmatpush.msra.mxu0 %v293_v46 }
  0x3e   : > { %403 = vmatpush.msra.mxu2 %v291_v47  ;;  %423 = vmatpush.msra.mxu3 %v292_v48 }
  0x3f   : > { %382 = vmatpush.msra.mxu1 %v294_v49  ;;  %363 = vmatpush.msra.mxu0 %v289_v50 }
  0x40   : > { %404 = vmatpush.msra.mxu2 %v287_v51  ;;  %424 = vmatpush.msra.mxu3 %v288_v52 }
  0x41   : > { %383 = vmatpush.msra.mxu1 %v290_v53  ;;  %364 = vmatpush.msra.mxu0 %v285_v54 }
  0x42   : > { %405 = vmatpush.msra.mxu2 %v283_v55  ;;  %425 = vmatpush.msra.mxu3 %v284_v56 }
  0x43   : > { %384 = vmatpush.msra.mxu1 %v286_v57  ;;  %365 = vmatpush.msra.mxu0 %v281_v58 }
  0x44   : > { %406 = vmatpush.msra.mxu2 %v279_v59  ;;  %426 = vmatpush.msra.mxu3 %v280_v60 }
  0x45   : > { %407 = vmatmul.f32.vlgmr.msra.gmra.mxu2 %v276_v61  ;;  %427 = vmatmul.f32.vlgmr.msra.gmra.mxu3 %v276_v61 }
  0x46   : > { %385 = vmatpush.msra.mxu1 %v282_v62  ;;  %366 = vmatpush.msra.mxu0 %v277_v63 }
  0x47   : > { %367 = vmatmul.f32.vlgmr.msra.gmra.mxu0 %v276_v61 }
  0x48   : > { %386 = vmatpush.msra.mxu1 %v278_v0 }
  0x49   : > { %387 = vmatmul.f32.vlgmr.msra.gmra.mxu1 %v276_v61 }
  0xc4   : > { %v368_v4 = vpop.f32.mrf.mxu0 }
  0xc5   : > { %v369_v5 = vadd.f32 %v368_v4, %v343_v2 }
  0xc6   : > { %v388_v8 = vpop.f32.mrf.mxu1 }
  0xc7   : > { %658 = vtanh.f32 %v369_v5  ;;  %v389_v9 = vadd.f32 %v388_v8, %v344_v3 }
  0xc8   : > { %v408_v10 = vpop.f32.mrf.mxu2  ;;  %v428_v11 = vpop.f32.mrf.mxu3 }
  0xc9   : > { %660 = vtanh.f32 %v389_v9  ;;  %v409_v12 = vadd.f32 %v408_v10, %v345_v6  ;;  %v429_v13 = vadd.f32 %v428_v11, %v346_v7 }
  0xcb   : > { %662 = vtanh.f32 %v409_v12 }
  0xcc   : > { %664 = vtanh.f32 %v429_v13 }
  0xcd   : > { %v659_v14 = vpop.eup %658 }
  0xce   : > { %435 = vst [vmem:[%s274_s26] sm:$0xff] %v659_v14 }
  0xcf   : > { %v661_v15 = vpop.eup %660 }
  0xd0   : > { %436 = vst [vmem:[%s274_s26 + $0x8] sm:$0xff] %v661_v15 }
  0xd1   : > { %v663_v16 = vpop.eup %662 }
  0xd2   : > { %v665_v17 = vpop.eup %664  ;;  %437 = vst [vmem:[%s274_s26 + $0x10] sm:$0xff] %v663_v16 }
  0xd3   : > { %438 = vst [vmem:[%s274_s26 + $0x18] sm:$0xff] %v665_v17 }
  0xd4 PF: > { %s17_s17 = sadd.s32 1, %s810_s17   ;;  %s1047_s12 = smov %s794_s13 }
  0xd5   : > { %p14_p2 = scmp.ge.s32.totalorder %s17_s17, 4   ;;  %s1048_s13 = smov %s798_s14 }
  0xd6   : > { %s1049_s14 = smov %s884_s25  ;;  %s1050_s15 = smov %s806_s16 }
  0xd7   : > { %s1051_s16 = smov %s1053_s18  ;;  %16 = sbr.rel (!%p14_p2) target bundleno = 5 (0x5), region = 89 }
  0xdc   :  { %469 = vsyncpa [#allocation3], 1 }
  0xdd   :  { %471 = vsyncpa [#allocation3 + $0x1], 1 }
  0xde   :  { %472 = vsyncpa [#allocation5], 1 }
  0xdf   :  { %474 = vsyncpa [#allocation5 + $0x1], 1 }

</bundles_post_ra>
